<compile_context>
chip_gen: v7x
topology: tpu7x:2x2x1
jax: 0.10.0
libtpu: 0.0.40
codegen_flags: <defaults>
</compile_context>

<pallas_src>
import functools

import jax
import jax.numpy as jnp
from jax.experimental import pallas as pl
from jax.experimental.pallas import tpu as pltpu


def _round_up(x, m):
    return (x + m - 1) // m * m


def _chip_kind():
    try:
        return jax.devices()[0].device_kind.lower()
    except Exception:  # pragma: no cover - defensive
        return ""


def _logmse_partial_kernel(o_ref, t_ref, out_ref, acc_ref, *,
                           hw_valid, tile_hw, need_mask):
    """One grid step: accumulate lane-wide per-row SSE for one (R, tile_hw) tile.

    o_ref, t_ref : (R, tile_hw) VMEM tiles of output / target (R = B*K rows)
    out_ref      : (1, R, 1) per-split per-row SSE (written once per split)
    acc_ref      : (R, tile_hw) f32 VMEM scratch, lane-wide accumulator that
                   stays resident across the reduction grid axis.
    """
    s = pl.program_id(0)   # parallel split (one per TensorCore on v7x)
    j = pl.program_id(1)   # reduction chunk within the split
    n_chunks = pl.num_programs(1)

    @pl.when(j == 0)
    def _():
        acc_ref[...] = jnp.zeros_like(acc_ref)

    d = o_ref[...].astype(jnp.float32) - t_ref[...].astype(jnp.float32)

    if need_mask:
        # Global (unclamped) lane position along the flattened H*W axis.
        blk = s * n_chunks + j
        pos = blk * tile_hw + jax.lax.broadcasted_iota(jnp.int32, (1, tile_hw), 1)
        # where-select (not multiply), so garbage/NaN in the overhang is inert.
        d = jnp.where(pos < hw_valid, d, 0.0)

    # VPU-only accumulation; cross-lane reduce deferred to the last chunk.
    acc_ref[...] += d * d

    @pl.when(j == n_chunks - 1)
    def _():
        # One XLU cross-lane reduce per split; HBM writeback is R*4 bytes.
        out_ref[...] = jnp.sum(acc_ref[...], axis=-1, keepdims=True)[None]


def log_mse_loss(output, target, *, per_buffer_bytes=None):
    """output, target: (B, K, H, W) float arrays. Returns scalar float32 loss."""
    assert output.shape == target.shape
    B, K, H, W = output.shape
    HW = H * W
    R = B * K            # rows after the free 2-D reshape
    M = B * HW           # elements per channel in the per-channel mean

    itemsize = jnp.dtype(output.dtype).itemsize
    # Sublane packing: 8 rows for 32-bit, 16 for 16-bit, 32 for 8-bit dtypes.
    sub_in = max(8, 32 // max(1, itemsize))
    r_pad_in = _round_up(R, sub_in)       # padded rows of an input VMEM tile
    r_pad_acc = _round_up(R, 8)           # padded rows of the f32 accumulator

    kind = _chip_kind()
    is_v7x = ("v7" in kind) or ("7x" in kind)
    tc_count = 2 if is_v7x else 1

    if per_buffer_bytes is None:
        # ~8 MiB per input pipeline buffer on v7x (per-step overhead matters at
        # 3.2 TB/s), ~4 MiB on v5e/v6e where DMA time dominates the overhead.
        per_buffer_bytes = (8 << 20) if is_v7x else (4 << 20)

    # Free, contiguous reshape: no transpose, no padding, no extra HBM pass.
    o2 = output.reshape(R, HW)
    t2 = target.reshape(R, HW)

    # ---- tile sizing (padding- and itemsize-aware) -------------------------
    max_tile = max(128, (per_buffer_bytes // (r_pad_in * itemsize)) // 128 * 128)
    if HW <= max_tile:
        tile_hw = HW          # full extent: exempt from the 128-lane constraint
    else:
        tile_hw = max_tile    # multiple of 128

    n_blocks = pl.cdiv(HW, tile_hw)

    # ---- split selection (generation aware) --------------------------------
    n_splits = 1
    if tc_count >= 2 and n_blocks >= 2:
        if n_blocks % 2 != 0:
            # Shrink the tile slightly so the block count becomes even and the
            # two splits cover the array exactly (no clamped redundant re-read).
            cand = min(tile_hw, _round_up(pl.cdiv(HW, n_blocks + 1), 128))
            if cand >= 128:
                nb2 = pl.cdiv(HW, cand)
                if nb2 % 2 == 0:
                    tile_hw, n_blocks = cand, nb2
        if n_blocks % 2 == 0:
            n_splits = 2
    n_chunks = n_blocks // n_splits
    assert n_splits * n_chunks == n_blocks

    # Skip in-kernel masking entirely when the grid covers H*W exactly.
    need_mask = (n_blocks * tile_hw) != HW

    def in_index_map(s, j):
        return (0, s * n_chunks + j)

    # ---- VMEM budget (actual padded footprint + headroom) ------------------
    buf_bytes = r_pad_in * tile_hw * itemsize       # one input pipeline buffer
    acc_bytes = r_pad_acc * tile_hw * 4             # f32 scratch accumulator
    vmem_needed = 4 * buf_bytes + acc_bytes + (4 << 20)
    vmem_limit = int(max(32 << 20, vmem_needed))

    if n_splits == 2:
        # Provably land the two splits on both v7x TensorCores.
        dim_sem = (pltpu.CORE_PARALLEL, pltpu.ARBITRARY)
    else:
        dim_sem = ("arbitrary", "arbitrary")

    kernel = functools.partial(
        _logmse_partial_kernel,
        hw_valid=HW, tile_hw=tile_hw, need_mask=need_mask)

    cost = pl.CostEstimate(
        flops=3 * B * K * HW,                     # sub, square, accumulate
        transcendentals=0,
        bytes_accessed=2 * B * K * HW * itemsize + n_splits * R * 4)

    partial_sse = pl.pallas_call(
        kernel,
        out_shape=jax.ShapeDtypeStruct((n_splits, R, 1), jnp.float32),
        grid_spec=pltpu.PrefetchScalarGridSpec(
            num_scalar_prefetch=0,
            grid=(n_splits, n_chunks),
            in_specs=[
                pl.BlockSpec((R, tile_hw), in_index_map),
                pl.BlockSpec((R, tile_hw), in_index_map),
            ],
            out_specs=pl.BlockSpec((1, R, 1), lambda s, j: (s, 0, 0)),
            scratch_shapes=[pltpu.VMEM((R, tile_hw), jnp.float32)],
        ),
        compiler_params=pltpu.CompilerParams(
            dimension_semantics=dim_sem,
            vmem_limit_bytes=vmem_limit,
        ),
        cost_estimate=cost,
    )(o2, t2)

    # Tiny final combine in XLA: sum partial SSE over splits, fold rows back to
    # (B, K), reduce over batch, per-channel mean, log, sum over channels.
    sse_rows = jnp.sum(partial_sse, axis=(0, 2))       # (B*K,)
    sse = sse_rows.reshape(B, K).sum(axis=0)           # (K,)
    mse = sse / jnp.float32(M)
    return jnp.sum(jnp.log(mse))


def _reference_log_mse_loss(output, target):
    """Pure-JAX reference mirroring the PyTorch loop."""
    nk = output.shape[1]
    loss = 0.0
    for i in range(nk):
        mse = jnp.mean((output[:, i] - target[:, i]) ** 2)
        loss = loss + jnp.log(mse)
    return loss.astype(jnp.float32)


if __name__ == "__main__":
    # Small shapes consistent with the module's (B, nk, H, W) usage.
    B, K, H, W = 2, 4, 16, 16
    key = jax.random.PRNGKey(0)
    k1, k2 = jax.random.split(key)
    output = jax.random.normal(k1, (B, K, H, W), dtype=jnp.float32)
    target = jax.random.normal(k2, (B, K, H, W), dtype=jnp.float32)

    loss = jax.block_until_ready(log_mse_loss(output, target))
    ref = jax.block_until_ready(_reference_log_mse_loss(output, target))

    assert jnp.allclose(loss, ref, rtol=1e-5, atol=1e-5), (loss, ref)
    print("KERNEL_OK")
</pallas_src>

<mosaic_0001>
module attributes {stable_mosaic.version = 11 : i64} {
  func.func @_logmse_partial_kernel(%arg0: i32, %arg1: i32, %arg2: memref<8x256xf32, #tpu.memory_space<vmem>>, %arg3: memref<8x256xf32, #tpu.memory_space<vmem>>, %arg4: memref<1x8x1xf32, #tpu.memory_space<vmem>>, %arg5: memref<8x256xf32, #tpu.memory_space<vmem>>) attributes {dimension_semantics = [#tpu.dimension_semantics<arbitrary>, #tpu.dimension_semantics<arbitrary>], iteration_bounds = array<i64: 1, 1>, scalar_prefetch = 0 : i64, scratch_operands = 1 : i64, tpu.core_type = #tpu.core_type<tc>, window_params = [{transform_indices = @transform_0, window_bounds = array<i64: 8, 256>}, {transform_indices = @transform_1, window_bounds = array<i64: 8, 256>}, {transform_indices = @transform_2, window_bounds = array<i64: 1, 8, 1>}]} {
    %c0_i32 = arith.constant 0 : i32
    %0 = arith.cmpi eq, %arg1, %c0_i32 : i32
    %1 = arith.extui %0 : i1 to i32
    %c0_i32_0 = arith.constant 0 : i32
    %2 = arith.cmpi ne, %1, %c0_i32_0 : i32
    scf.if %2 {
      %cst = arith.constant 0.000000e+00 : f32
      %13 = vector.broadcast %cst : f32 to vector<8x256xf32>
      %c0_10 = arith.constant 0 : index
      %c0_11 = arith.constant 0 : index
      %14 = vector.load %arg5[%c0_10, %c0_11] : memref<8x256xf32, #tpu.memory_space<vmem>>, vector<8x256xf32>
      tpu.vector_store %arg5[%c0_10, %c0_11], %13 {strides = array<i32>} : memref<8x256xf32, #tpu.memory_space<vmem>>, vector<8x256xf32>,
    } else {
    }
    %c0 = arith.constant 0 : index
    %c0_1 = arith.constant 0 : index
    %3 = vector.load %arg2[%c0, %c0_1] : memref<8x256xf32, #tpu.memory_space<vmem>>, vector<8x256xf32>
    %c0_2 = arith.constant 0 : index
    %c0_3 = arith.constant 0 : index
    %4 = vector.load %arg3[%c0_2, %c0_3] : memref<8x256xf32, #tpu.memory_space<vmem>>, vector<8x256xf32>
    %5 = arith.subf %3, %4 : vector<8x256xf32>
    %c0_4 = arith.constant 0 : index
    %c0_5 = arith.constant 0 : index
    %6 = vector.load %arg5[%c0_4, %c0_5] : memref<8x256xf32, #tpu.memory_space<vmem>>, vector<8x256xf32>
    %7 = arith.mulf %5, %5 : vector<8x256xf32>
    %8 = arith.addf %6, %7 : vector<8x256xf32>
    %c0_6 = arith.constant 0 : index
    %c0_7 = arith.constant 0 : index
    %9 = vector.load %arg5[%c0_6, %c0_7] : memref<8x256xf32, #tpu.memory_space<vmem>>, vector<8x256xf32>
    tpu.vector_store %arg5[%c0_6, %c0_7], %8 {strides = array<i32>} : memref<8x256xf32, #tpu.memory_space<vmem>>, vector<8x256xf32>,
    %c0_i32_8 = arith.constant 0 : i32
    %10 = arith.cmpi eq, %arg1, %c0_i32_8 : i32
    %11 = arith.extui %10 : i1 to i32
    %c0_i32_9 = arith.constant 0 : i32
    %12 = arith.cmpi ne, %11, %c0_i32_9 : i32
    scf.if %12 {
      %c0_10 = arith.constant 0 : index
      %c0_11 = arith.constant 0 : index
      %13 = vector.load %arg5[%c0_10, %c0_11] : memref<8x256xf32, #tpu.memory_space<vmem>>, vector<8x256xf32>
      %cst = arith.constant dense<0.000000e+00> : vector<8xf32>
      %14 = vector.multi_reduction <add>, %13, %cst [1] : vector<8x256xf32> to vector<8xf32>
      %15 = vector.shape_cast %14 : vector<8xf32> to vector<8x1xf32>
      %16 = vector.shape_cast %15 : vector<8x1xf32> to vector<1x8x1xf32>
      %c0_12 = arith.constant 0 : index
      %c0_13 = arith.constant 0 : index
      %c0_14 = arith.constant 0 : index
      %17 = vector.load %arg4[%c0_12, %c0_13, %c0_14] : memref<1x8x1xf32, #tpu.memory_space<vmem>>, vector<1x8x1xf32>
      tpu.vector_store %arg4[%c0_12, %c0_13, %c0_14], %16 {strides = array<i32>} : memref<1x8x1xf32, #tpu.memory_space<vmem>>, vector<1x8x1xf32>,
    } else {
    }
    return
  }
  func.func @transform_0(%arg0: i32, %arg1: i32) -> (i32, i32) {
    %c1_i32 = arith.constant 1 : i32
    %0 = arith.muli %arg0, %c1_i32 : i32
    %1 = arith.addi %0, %arg1 : i32
    %c0_i32 = arith.constant 0 : i32
    %c0_i32_0 = arith.constant 0 : i32
    return %c0_i32, %1 : i32, i32
  }
  func.func @transform_1(%arg0: i32, %arg1: i32) -> (i32, i32) {
    %c1_i32 = arith.constant 1 : i32
    %0 = arith.muli %arg0, %c1_i32 : i32
    %1 = arith.addi %0, %arg1 : i32
    %c0_i32 = arith.constant 0 : i32
    %c0_i32_0 = arith.constant 0 : i32
    return %c0_i32, %1 : i32, i32
  }
  func.func @transform_2(%arg0: i32, %arg1: i32) -> (i32, i32, i32) {
    %c0_i32 = arith.constant 0 : i32
    %c0_i32_0 = arith.constant 0 : i32
    %c0_i32_1 = arith.constant 0 : i32
    return %arg0, %c0_i32, %c0_i32_0 : i32, i32, i32
  }
}

</mosaic_0001>

<bundles_post_ra>
// kernel: tpu_custom_call.1
= control target key start
LH: loop header
LB: loop body
LE: loop exit
PB: predicated region body
PF: predicated region fallthrough
CT: control target
= control target key end

     0   :  { %7 = vsyncpa [#allocation4], 0  ;;  %s177_s0 = inlined_call_operand.hbm [shape: f32[8,256], index: 0, kind: input, shape index: {}]   ;;  %s178_s1 = inlined_call_operand.hbm [shape: f32[8,256], index: 1, kind: input, shape index: {}]   ;;  %s179_s2 = inlined_call_operand.vmem [shape: f32[1,8,1], index: 2, kind: output, shape index: {}]  }
   0x1   :  { %8 = vsyncpa [#allocation6], 0  ;;  %s133_s9 = smov [#allocation3]   ;;  %s134_s11 = smov [#allocation5]  }
   0x2   :  { %s19_s10 = sshll.u32 %s133_s9, 4  ;;  %s33_s12 = sshll.u32 %s134_s11, 4  ;;  %s20_s10 = int_to_ptr.vmem [resolvable:$true] %s19_s10  ;;  %s34_s12 = int_to_ptr.vmem [resolvable:$true] %s33_s12 }
   0x3   :  { %s85_s15 = scalar_lea.hbm %s177_s0, 256 }
   0x4   :  { %p86_p0 = scmp.ne.s32.totalorder %s177_s0, %s85_s15  ;;  %p89_p1 = scmp.lt.u32.totalorder %s85_s15, %s177_s0 }
   0x6   :  { %p91_p2 = pnand %p89_p1, %p86_p0 }
   0x8   :  { %94 = shalt.err (!%p91_p2)
}
   0x9   :  { %s95_s20 = scalar_lea.vmem %s20_s10, 256  ;;  %p100_p4 = scmp.lt.s32.totalorder %s20_s10, %s20_s10 }
   0xa   :  { %p96_p3 = scmp.ne.s32.totalorder %s20_s10, %s95_s20  ;;  %p101_p5 = scmp.lt.s32.totalorder %s95_s20, %s95_s20 }
   0xc   :  { %p102_p6 = por %p101_p5, %p100_p4 }
   0xe   :  { %p103_p7 = pnand %p102_p6, %p96_p3 }
  0x10   :  { %106 = shalt.err (!%p103_p7)
}
  0x11   :  { %22 = dma.hbm_to_vmem [thread:$0]  %s177_s0, 256, %s20_s10, [#allocation4]  }
  0x12   :  { %s107_s25 = scalar_lea.hbm %s178_s1, 256 }
  0x13   :  { %p108_p8 = scmp.ne.s32.totalorder %s178_s1, %s107_s25  ;;  %p111_p9 = scmp.lt.u32.totalorder %s107_s25, %s178_s1 }
  0x15   :  { %p113_p10 = pnand %p111_p9, %p108_p8 }
  0x17   :  { %116 = shalt.err (!%p113_p10)
}
  0x18   :  { %s117_s30 = scalar_lea.vmem %s34_s12, 256  ;;  %p122_p12 = scmp.lt.s32.totalorder %s34_s12, %s34_s12 }
  0x19   :  { %p118_p11 = scmp.ne.s32.totalorder %s34_s12, %s117_s30  ;;  %p123_p13 = scmp.lt.s32.totalorder %s117_s30, %s117_s30 }
  0x1b   :  { %p124_p0 = por %p123_p13, %p122_p12 }
  0x1d   :  { %p125_p1 = pnand %p124_p0, %p118_p11 }
  0x1f   :  { %128 = shalt.err (!%p125_p1)
}
  0x20   :  { %36 = dma.hbm_to_vmem [thread:$0]  %s178_s1, 256, %s34_s12, [#allocation6]  }
  0x21   :  { %129 = dma.done.wait [#allocation4], 256  }
  0x22   :  { %130 = vsyncadd [#allocation4], 4294967040 }
  0x23   :  { %131 = dma.done.wait [#allocation6], 256  }
  0x24   :  { %132 = vsyncadd [#allocation6], 4294967040  ;;  %v53_v0 = vld [vmem:[#allocation3] sm:$0xff]  ;;  %v54_v1 = vld [vmem:[#allocation3 + $0x8] sm:$0xff]  ;;  %vm75_vm0 = vcmask 7168  }
  0x25   :  { %v55_v2 = vld [vmem:[#allocation5] sm:$0xff]  ;;  %v56_v3 = vld [vmem:[#allocation5 + $0x8] sm:$0xff] }
  0x26   :  { %v57_v4 = vsub.f32 %v53_v0, %v55_v2  ;;  %v58_v5 = vsub.f32 %v54_v1, %v56_v3 }
  0x28   :  { %v61_v6 = vmul.f32 %v57_v4, %v57_v4  ;;  %v62_v7 = vmul.f32 %v58_v5, %v58_v5 }
  0x2a   :  { %v72_v8 = vadd.f32 %v62_v7, %v61_v6 }
  0x2c   :  { %73 = vadd.xlane.f32.xlu0 %v72_v8 }
  0xb9   :  { %v74_v9 = vpop.xlane.xlu0 %73 }
  0xba   :  { %76 = vst.msk [vmem:[%s179_s2] sm:$0xff] %vm75_vm0, %v74_v9 }
  0xbb   :  { %81 = vsyncpa [#allocation4], 1 }
  0xbc   :  { %82 = vsyncpa [#allocation6], 1 }

</bundles_post_ra>
